<compile_context>
chip_gen: v7x
topology: tpu7x:2x2x1
jax: 0.10.0
libtpu: 0.0.40
codegen_flags: <defaults>
</compile_context>

<pallas_src>
import functools

import jax
import jax.numpy as jnp
from jax.experimental import pallas as pl
from jax.experimental.pallas import tpu as pltpu

_LANE = 128


# ----------------------------------------------------------------------------
# Kernel: one batch tile of the full 4-layer MLP forward pass.
# Activations: [rows, features] (features on the lane axis).
# Weights stored [in, out] (transposed vs. PyTorch), so y = x @ W + b on the MXU.
# MXU operands are `w1_ref.dtype` (bf16 by default); accumulation / bias / ReLU
# stay f32 on the VPU (safe on v5e, which has no bf16 VALU).
# ----------------------------------------------------------------------------
def _mlp_kernel(x_ref,
                w1_ref, b1_ref,
                w2_ref, b2_ref,
                w3_ref, b3_ref,
                w4_ref, b4_ref,
                o_ref):
    cd = w1_ref.dtype

    h = jnp.dot(x_ref[...], w1_ref[...],
                preferred_element_type=jnp.float32) + b1_ref[...]
    h = jnp.maximum(h, 0.0)                                        # relu1 (f32)

    h = jnp.dot(h.astype(cd), w2_ref[...],
                preferred_element_type=jnp.float32) + b2_ref[...]
    h = jnp.maximum(h, 0.0)                                        # relu2

    h = jnp.dot(h.astype(cd), w3_ref[...],
                preferred_element_type=jnp.float32) + b3_ref[...]
    h = jnp.maximum(h, 0.0)                                        # relu3

    out = jnp.dot(h.astype(cd), w4_ref[...],
                  preferred_element_type=jnp.float32) + b4_ref[...]
    o_ref[...] = out.astype(o_ref.dtype)


# ----------------------------------------------------------------------------
# Helpers
# ----------------------------------------------------------------------------
def _round_up(n, m):
    return (n + m - 1) // m * m


def _sublane(dtype):
    """Native sublane tile for a dtype: f32->8, bf16->16, fp8/int8->32."""
    return max(8, 32 // jnp.dtype(dtype).itemsize)


def _has_pipeline_mode():
    """Explicit capability check for BlockSpec(pipeline_mode=pl.Buffered(1))."""
    if not hasattr(pl, "Buffered"):
        return False
    try:
        pl.BlockSpec((8, 128), lambda i: (0, 0), pipeline_mode=pl.Buffered(1))
        return True
    except TypeError:
        return False


_SINGLE_BUFFER_WEIGHTS = _has_pipeline_mode()


@functools.lru_cache(maxsize=1)
def _tpu_vmem_budget():
    """(vmem_budget_bytes, vmem_limit_bytes, num_tensorcores) per generation."""
    vmem_cap = None
    try:
        vmem_cap = int(pltpu.get_tpu_info().vmem_capacity_bytes)
    except Exception:
        pass
    if vmem_cap is None:
        # Unknown chip: be conservative (v7x-like VMEM), assume 1 TC.
        return 26 << 20, 48 << 20, 1
    if vmem_cap <= 64 * 1024 * 1024:
        # v7x: 64 MiB physical per TC, 2 TensorCores per chip.
        return 26 << 20, 48 << 20, 2
    # v5e / v6e: 128 MiB physical, single TensorCore — use the headroom.
    return 80 << 20, 100 << 20, 1


def _pick_batch_tile(b_ref, in_p, hid_p, out_p, cdtype, out_dtype,
                     budget, num_tc, single_buffer_weights):
    """Largest batch tile whose working set fits the generation-aware budget."""
    sub = _sublane(cdtype)
    cbytes = jnp.dtype(cdtype).itemsize
    obytes = jnp.dtype(out_dtype).itemsize

    wbuf = 1 if single_buffer_weights else 2
    weight_bytes = wbuf * cbytes * (in_p * hid_p + 2 * hid_p * hid_p + hid_p * out_p)
    bias_bytes = wbuf * 4 * (3 * hid_p + out_p)
    internal = 2 << 20              # allowance for Mosaic internal scratch
    avail = budget - weight_bytes - bias_bytes - internal
    if avail < (1 << 20):
        # TODO(synk): for very large hidden_dim split the fusion per-layer (or
        # tile each layer's output features) instead of degenerating to a tiny
        # batch tile; fp8 weights on v7x would also halve the resident bytes.
        raise ValueError(
            f"mlp_valen resident weights ({(weight_bytes + bias_bytes) >> 20} MiB)"
            f" exceed the {budget >> 20} MiB VMEM budget; use bf16/fp8 weights or"
            " a smaller hidden_dim.")

    # Per-row working set: double-buffered x tile + double-buffered out tile +
    # ~2 live f32 intermediates (one hidden activation + one matmul result).
    per_row = 2 * in_p * cbytes + 2 * out_p * obytes + 2 * hid_p * 4
    tb = avail // per_row
    tb = max(sub, min(int(tb), 4096) // sub * sub)
    tb = min(tb, _round_up(b_ref, sub))

    if num_tc >= 2:
        # v7x megacore: shard the "parallel" batch axis across both TCs with an
        # even number of grid steps (odd counts leave one core ~33% idle).
        steps = -(-b_ref // tb)
        if steps == 1:
            if b_ref >= 1024:
                tb = _round_up(-(-b_ref // 2), sub)
        elif steps % 2 == 1:
            tb_try = _round_up(-(-b_ref // (steps + 1)), sub)
            if (-(-b_ref // tb_try)) % 2 == 0:
                tb = tb_try
    return int(tb)


# ----------------------------------------------------------------------------
# Forward pass (padded params path — the hot path)
# ----------------------------------------------------------------------------
@functools.partial(
    jax.jit,
    static_argnames=("output_dim", "batch_tile", "budget", "vmem_limit",
                     "num_tc", "single_buffer_weights"))
def _forward_padded(x, w1, b1, w2, b2, w3, b3, w4, b4, *, output_dim,
                    batch_tile, budget, vmem_limit, num_tc,
                    single_buffer_weights):
    B, input_dim = x.shape
    in_p, hid_p = w1.shape
    out_p = w4.shape[1]
    cdtype = w1.dtype                      # MXU operand dtype (bf16 or f32)
    out_dtype = jnp.float32                # output stays f32 (matches reference)
    sub = _sublane(cdtype)

    if batch_tile is not None:
        tb = max(sub, min(int(batch_tile), 4096) // sub * sub)
        tb = min(tb, _round_up(B, sub))
    else:
        tb = _pick_batch_tile(_round_up(B, sub), in_p, hid_p, out_p, cdtype,
                              out_dtype, budget, num_tc, single_buffer_weights)

    # Pad rows to a multiple of the tile so every output block is a full,
    # unmasked lane-dense store.
    b_p = _round_up(B, tb)
    x_p = jnp.pad(x, ((0, b_p - B), (0, in_p - input_dim))).astype(cdtype)
    grid = (b_p // tb,)

    # Constant operands: block index never changes -> single-buffer them so the
    # VMEM they'd double-buffer goes to the batch tile instead.
    def const_spec(shape):
        if single_buffer_weights:
            return pl.BlockSpec(shape, lambda i: (0, 0),
                                pipeline_mode=pl.Buffered(1))
        return pl.BlockSpec(shape, lambda i: (0, 0))

    cbytes = jnp.dtype(cdtype).itemsize
    weight_bytes = cbytes * (in_p * hid_p + 2 * hid_p * hid_p + hid_p * out_p)
    cost = pl.CostEstimate(
        flops=2 * b_p * (in_p * hid_p + 2 * hid_p * hid_p + hid_p * out_p),
        transcendentals=0,
        bytes_accessed=(b_p * in_p * cbytes
                        + b_p * out_p * jnp.dtype(out_dtype).itemsize
                        + weight_bytes + 4 * (3 * hid_p + out_p)),
    )

    out_padded = pl.pallas_call(
        _mlp_kernel,
        out_shape=jax.ShapeDtypeStruct((b_p, out_p), out_dtype),
        grid_spec=pl.GridSpec(
            grid=grid,
            in_specs=[
                pl.BlockSpec((tb, in_p), lambda i: (i, 0)),   # x tile
                const_spec((in_p, hid_p)),                    # w1
                const_spec((1, hid_p)),                       # b1 (f32)
                const_spec((hid_p, hid_p)),                   # w2
                const_spec((1, hid_p)),                       # b2
                const_spec((hid_p, hid_p)),                   # w3
                const_spec((1, hid_p)),                       # b3
                const_spec((hid_p, out_p)),                   # w4
                const_spec((1, out_p)),                       # b4
            ],
            out_specs=pl.BlockSpec((tb, out_p), lambda i: (i, 0)),
        ),
        compiler_params=pltpu.CompilerParams(
            dimension_semantics=("parallel",),
            vmem_limit_bytes=vmem_limit,
        ),
        cost_estimate=cost,
    )(x_p, w1, b1, w2, b2, w3, b3, w4, b4)

    # NOTE: for tiny output_dim (demo: 8 -> 128) layer 4 is padding-dominated;
    # that is inherent to lane-dense MXU stores and cheap at these sizes.
    return out_padded[:B, :output_dim]


# ----------------------------------------------------------------------------
# Parameter preparation (hoisted out of the per-call hot path) & wrappers
# ----------------------------------------------------------------------------
def prepare_params(params, *, use_bf16=True):
    """Pad features to lane multiples (128) and cast weights to the MXU operand
    dtype ONCE.  Biases stay f32 (added to the f32 accumulator)."""
    cdtype = jnp.bfloat16 if use_bf16 else jnp.float32
    input_dim, hidden_dim = params["w1"].shape
    output_dim = params["w4"].shape[1]
    in_p = _round_up(input_dim, _LANE)
    hid_p = _round_up(hidden_dim, _LANE)
    out_p = _round_up(output_dim, _LANE)

    def pad_w(w, rows, cols):
        w = jnp.asarray(w, jnp.float32)
        return jnp.pad(w, ((0, rows - w.shape[0]),
                           (0, cols - w.shape[1]))).astype(cdtype)

    def pad_b(b, cols):
        b2 = jnp.asarray(b, jnp.float32).reshape(1, -1)
        return jnp.pad(b2, ((0, 0), (0, cols - b2.shape[1])))

    # TODO(synk): on v7x, consider fp8 (e4m3) weight storage with bf16
    # activations (f32 accumulate) to further halve resident weight VMEM/HBM.
    padded = dict(
        w1=pad_w(params["w1"], in_p, hid_p), b1=pad_b(params["b1"], hid_p),
        w2=pad_w(params["w2"], hid_p, hid_p), b2=pad_b(params["b2"], hid_p),
        w3=pad_w(params["w3"], hid_p, hid_p), b3=pad_b(params["b3"], hid_p),
        w4=pad_w(params["w4"], hid_p, out_p), b4=pad_b(params["b4"], out_p),
    )
    return padded, output_dim


def make_mlp_valen_forward(params, *, use_bf16=True, batch_tile=None):
    """Pre-pad params once and return a reusable forward function of x."""
    padded, output_dim = prepare_params(params, use_bf16=use_bf16)
    budget, vmem_limit, num_tc = _tpu_vmem_budget()

    def forward(x):
        return _forward_padded(
            x, padded["w1"], padded["b1"], padded["w2"], padded["b2"],
            padded["w3"], padded["b3"], padded["w4"], padded["b4"],
            output_dim=output_dim, batch_tile=batch_tile, budget=budget,
            vmem_limit=vmem_limit, num_tc=num_tc,
            single_buffer_weights=_SINGLE_BUFFER_WEIGHTS)

    return forward


def mlp_valen_forward(x, params, *, use_bf16=True, batch_tile=None):
    """One-shot convenience wrapper (re-pads params; prefer
    make_mlp_valen_forward for repeated inference)."""
    return make_mlp_valen_forward(params, use_bf16=use_bf16,
                                  batch_tile=batch_tile)(x)


# ----------------------------------------------------------------------------
# Parameter init & pure-JAX reference (same math as the PyTorch module)
# ----------------------------------------------------------------------------
def init_params(key, input_dim, hidden_dim, output_dim):
    """Mimics nn.Linear's uniform(-1/sqrt(in), 1/sqrt(in)); weights are [in, out]."""
    dims = [(input_dim, hidden_dim),
            (hidden_dim, hidden_dim),
            (hidden_dim, hidden_dim),
            (hidden_dim, output_dim)]
    params = {}
    for idx, (fan_in, fan_out) in enumerate(dims, start=1):
        key, kw, kb = jax.random.split(key, 3)
        bound = 1.0 / jnp.sqrt(fan_in)
        params[f"w{idx}"] = jax.random.uniform(
            kw, (fan_in, fan_out), jnp.float32, -bound, bound)
        params[f"b{idx}"] = jax.random.uniform(
            kb, (1, fan_out), jnp.float32, -bound, bound)
    return params


def reference_forward(x, params):
    h = jnp.maximum(x @ params["w1"] + params["b1"], 0.0)
    h = jnp.maximum(h @ params["w2"] + params["b2"], 0.0)
    h = jnp.maximum(h @ params["w3"] + params["b3"], 0.0)
    return h @ params["w4"] + params["b4"]


if __name__ == "__main__":
    key = jax.random.PRNGKey(0)
    batch, input_dim, hidden_dim, output_dim = 8, 16, 32, 8

    key, kx, kp = jax.random.split(key, 3)
    x = jax.random.normal(kx, (batch, input_dim), jnp.float32)
    params = init_params(kp, input_dim, hidden_dim, output_dim)

    ref = reference_forward(x, params)

    # Default path: bf16 MXU operands, f32 accumulation (expected bf16-level
    # quantization vs. the f32 reference).
    fwd_bf16 = make_mlp_valen_forward(params)           # use_bf16=True default
    out_bf16 = jax.block_until_ready(fwd_bf16(x))
    assert out_bf16.shape == (batch, output_dim)
    assert jnp.allclose(out_bf16, ref, atol=5e-2, rtol=5e-2), \
        "bf16 path mismatch vs reference"

    # f32 path for an exact numerical check of the kernel math.
    fwd_f32 = make_mlp_valen_forward(params, use_bf16=False)
    out_f32 = jax.block_until_ready(fwd_f32(x))
    assert out_f32.shape == (batch, output_dim)
    assert jnp.allclose(out_f32, ref, atol=1e-4, rtol=1e-4), \
        "f32 path mismatch vs reference"

    print("KERNEL_OK")
</pallas_src>

<mosaic_0001>
module attributes {stable_mosaic.version = 11 : i64} {
  func.func @_mlp_kernel(%arg0: i32, %arg1: memref<16x128xbf16, #tpu.memory_space<vmem>>, %arg2: memref<128x128xbf16, #tpu.memory_space<vmem>>, %arg3: memref<1x128xf32, #tpu.memory_space<vmem>>, %arg4: memref<128x128xbf16, #tpu.memory_space<vmem>>, %arg5: memref<1x128xf32, #tpu.memory_space<vmem>>, %arg6: memref<128x128xbf16, #tpu.memory_space<vmem>>, %arg7: memref<1x128xf32, #tpu.memory_space<vmem>>, %arg8: memref<128x128xbf16, #tpu.memory_space<vmem>>, %arg9: memref<1x128xf32, #tpu.memory_space<vmem>>, %arg10: memref<16x128xf32, #tpu.memory_space<vmem>>) attributes {dimension_semantics = [#tpu.dimension_semantics<parallel>], iteration_bounds = array<i64: 1>, scalar_prefetch = 0 : i64, scratch_operands = 0 : i64, tpu.core_type = #tpu.core_type<tc>, window_params = [{transform_indices = @transform_0, window_bounds = array<i64: 16, 128>}, {pipeline_mode = #tpu.pipeline_mode<synchronous>, transform_indices = @transform_1, window_bounds = array<i64: 128, 128>}, {pipeline_mode = #tpu.pipeline_mode<synchronous>, transform_indices = @transform_2, window_bounds = array<i64: 1, 128>}, {pipeline_mode = #tpu.pipeline_mode<synchronous>, transform_indices = @transform_3, window_bounds = array<i64: 128, 128>}, {pipeline_mode = #tpu.pipeline_mode<synchronous>, transform_indices = @transform_4, window_bounds = array<i64: 1, 128>}, {pipeline_mode = #tpu.pipeline_mode<synchronous>, transform_indices = @transform_5, window_bounds = array<i64: 128, 128>}, {pipeline_mode = #tpu.pipeline_mode<synchronous>, transform_indices = @transform_6, window_bounds = array<i64: 1, 128>}, {pipeline_mode = #tpu.pipeline_mode<synchronous>, transform_indices = @transform_7, window_bounds = array<i64: 128, 128>}, {pipeline_mode = #tpu.pipeline_mode<synchronous>, transform_indices = @transform_8, window_bounds = array<i64: 1, 128>}, {transform_indices = @transform_9, window_bounds = array<i64: 16, 128>}]} {
    %c0 = arith.constant 0 : index
    %c0_0 = arith.constant 0 : index
    %0 = vector.load %arg1[%c0, %c0_0] : memref<16x128xbf16, #tpu.memory_space<vmem>>, vector<16x128xbf16>
    %c0_1 = arith.constant 0 : index
    %c0_2 = arith.constant 0 : index
    %1 = vector.load %arg2[%c0_1, %c0_2] : memref<128x128xbf16, #tpu.memory_space<vmem>>, vector<128x128xbf16>
    %cst = arith.constant dense<0.000000e+00> : vector<16x128xf32>
    %2 = tpu.matmul %0, %1, %cst {dimension_numbers = #tpu.dot_dimension_numbers<[1], [0], [0], [1], [0, 0, 1, 1], [], []>} : vector<16x128xbf16>, vector<128x128xbf16>, vector<16x128xf32> -> vector<16x128xf32>
    %c0_3 = arith.constant 0 : index
    %c0_4 = arith.constant 0 : index
    %3 = vector.load %arg3[%c0_3, %c0_4] : memref<1x128xf32, #tpu.memory_space<vmem>>, vector<1x128xf32>
    %4 = vector.broadcast %3 : vector<1x128xf32> to vector<16x128xf32>
    %5 = arith.addf %2, %4 : vector<16x128xf32>
    %cst_5 = arith.constant 0.000000e+00 : f32
    %6 = vector.broadcast %cst_5 : f32 to vector<16x128xf32>
    %7 = arith.maximumf %5, %6 : vector<16x128xf32>
    %8 = arith.truncf %7 : vector<16x128xf32> to vector<16x128xbf16>
    %c0_6 = arith.constant 0 : index
    %c0_7 = arith.constant 0 : index
    %9 = vector.load %arg4[%c0_6, %c0_7] : memref<128x128xbf16, #tpu.memory_space<vmem>>, vector<128x128xbf16>
    %cst_8 = arith.constant dense<0.000000e+00> : vector<16x128xf32>
    %10 = tpu.matmul %8, %9, %cst_8 {dimension_numbers = #tpu.dot_dimension_numbers<[1], [0], [0], [1], [0, 0, 1, 1], [], []>} : vector<16x128xbf16>, vector<128x128xbf16>, vector<16x128xf32> -> vector<16x128xf32>
    %c0_9 = arith.constant 0 : index
    %c0_10 = arith.constant 0 : index
    %11 = vector.load %arg5[%c0_9, %c0_10] : memref<1x128xf32, #tpu.memory_space<vmem>>, vector<1x128xf32>
    %12 = vector.broadcast %11 : vector<1x128xf32> to vector<16x128xf32>
    %13 = arith.addf %10, %12 : vector<16x128xf32>
    %cst_11 = arith.constant 0.000000e+00 : f32
    %14 = vector.broadcast %cst_11 : f32 to vector<16x128xf32>
    %15 = arith.maximumf %13, %14 : vector<16x128xf32>
    %16 = arith.truncf %15 : vector<16x128xf32> to vector<16x128xbf16>
    %c0_12 = arith.constant 0 : index
    %c0_13 = arith.constant 0 : index
    %17 = vector.load %arg6[%c0_12, %c0_13] : memref<128x128xbf16, #tpu.memory_space<vmem>>, vector<128x128xbf16>
    %cst_14 = arith.constant dense<0.000000e+00> : vector<16x128xf32>
    %18 = tpu.matmul %16, %17, %cst_14 {dimension_numbers = #tpu.dot_dimension_numbers<[1], [0], [0], [1], [0, 0, 1, 1], [], []>} : vector<16x128xbf16>, vector<128x128xbf16>, vector<16x128xf32> -> vector<16x128xf32>
    %c0_15 = arith.constant 0 : index
    %c0_16 = arith.constant 0 : index
    %19 = vector.load %arg7[%c0_15, %c0_16] : memref<1x128xf32, #tpu.memory_space<vmem>>, vector<1x128xf32>
    %20 = vector.broadcast %19 : vector<1x128xf32> to vector<16x128xf32>
    %21 = arith.addf %18, %20 : vector<16x128xf32>
    %cst_17 = arith.constant 0.000000e+00 : f32
    %22 = vector.broadcast %cst_17 : f32 to vector<16x128xf32>
    %23 = arith.maximumf %21, %22 : vector<16x128xf32>
    %24 = arith.truncf %23 : vector<16x128xf32> to vector<16x128xbf16>
    %c0_18 = arith.constant 0 : index
    %c0_19 = arith.constant 0 : index
    %25 = vector.load %arg8[%c0_18, %c0_19] : memref<128x128xbf16, #tpu.memory_space<vmem>>, vector<128x128xbf16>
    %cst_20 = arith.constant dense<0.000000e+00> : vector<16x128xf32>
    %26 = tpu.matmul %24, %25, %cst_20 {dimension_numbers = #tpu.dot_dimension_numbers<[1], [0], [0], [1], [0, 0, 1, 1], [], []>} : vector<16x128xbf16>, vector<128x128xbf16>, vector<16x128xf32> -> vector<16x128xf32>
    %c0_21 = arith.constant 0 : index
    %c0_22 = arith.constant 0 : index
    %27 = vector.load %arg9[%c0_21, %c0_22] : memref<1x128xf32, #tpu.memory_space<vmem>>, vector<1x128xf32>
    %28 = vector.broadcast %27 : vector<1x128xf32> to vector<16x128xf32>
    %29 = arith.addf %26, %28 : vector<16x128xf32>
    %c0_23 = arith.constant 0 : index
    %c0_24 = arith.constant 0 : index
    %30 = vector.load %arg10[%c0_23, %c0_24] : memref<16x128xf32, #tpu.memory_space<vmem>>, vector<16x128xf32>
    tpu.vector_store %arg10[%c0_23, %c0_24], %29 {strides = array<i32>} : memref<16x128xf32, #tpu.memory_space<vmem>>, vector<16x128xf32>,
    return
  }
  func.func @transform_0(%arg0: i32) -> (i32, i32) {
    %c0_i32 = arith.constant 0 : i32
    %c0_i32_0 = arith.constant 0 : i32
    return %arg0, %c0_i32 : i32, i32
  }
  func.func @transform_1(%arg0: i32) -> (i32, i32) {
    %c0_i32 = arith.constant 0 : i32
    %c0_i32_0 = arith.constant 0 : i32
    %c0_i32_1 = arith.constant 0 : i32
    return %c0_i32, %c0_i32_0 : i32, i32
  }
  func.func @transform_2(%arg0: i32) -> (i32, i32) {
    %c0_i32 = arith.constant 0 : i32
    %c0_i32_0 = arith.constant 0 : i32
    %c0_i32_1 = arith.constant 0 : i32
    return %c0_i32, %c0_i32_0 : i32, i32
  }
  func.func @transform_3(%arg0: i32) -> (i32, i32) {
    %c0_i32 = arith.constant 0 : i32
    %c0_i32_0 = arith.constant 0 : i32
    %c0_i32_1 = arith.constant 0 : i32
    return %c0_i32, %c0_i32_0 : i32, i32
  }
  func.func @transform_4(%arg0: i32) -> (i32, i32) {
    %c0_i32 = arith.constant 0 : i32
    %c0_i32_0 = arith.constant 0 : i32
    %c0_i32_1 = arith.constant 0 : i32
    return %c0_i32, %c0_i32_0 : i32, i32
  }
  func.func @transform_5(%arg0: i32) -> (i32, i32) {
    %c0_i32 = arith.constant 0 : i32
    %c0_i32_0 = arith.constant 0 : i32
    %c0_i32_1 = arith.constant 0 : i32
    return %c0_i32, %c0_i32_0 : i32, i32
  }
  func.func @transform_6(%arg0: i32) -> (i32, i32) {
    %c0_i32 = arith.constant 0 : i32
    %c0_i32_0 = arith.constant 0 : i32
    %c0_i32_1 = arith.constant 0 : i32
    return %c0_i32, %c0_i32_0 : i32, i32
  }
  func.func @transform_7(%arg0: i32) -> (i32, i32) {
    %c0_i32 = arith.constant 0 : i32
    %c0_i32_0 = arith.constant 0 : i32
    %c0_i32_1 = arith.constant 0 : i32
    return %c0_i32, %c0_i32_0 : i32, i32
  }
  func.func @transform_8(%arg0: i32) -> (i32, i32) {
    %c0_i32 = arith.constant 0 : i32
    %c0_i32_0 = arith.constant 0 : i32
    %c0_i32_1 = arith.constant 0 : i32
    return %c0_i32, %c0_i32_0 : i32, i32
  }
  func.func @transform_9(%arg0: i32) -> (i32, i32) {
    %c0_i32 = arith.constant 0 : i32
    %c0_i32_0 = arith.constant 0 : i32
    return %arg0, %c0_i32 : i32, i32
  }
}

</mosaic_0001>

<bundles_post_ra>
// kernel: _forward_padded.1
= control target key start
LH: loop header
LB: loop body
LE: loop exit
PB: predicated region body
PF: predicated region fallthrough
CT: control target
= control target key end

     0   :  { %14 = vsyncpa [#allocation3], 0  ;;  %s1043_s0 = inlined_call_operand.vmem [shape: bf16[16,128], index: 0, kind: input, shape index: {}]   ;;  %s1044_s1 = inlined_call_operand.hbm [shape: bf16[128,128], index: 1, kind: input, shape index: {}]   ;;  %s1045_s2 = inlined_call_operand.vmem [shape: f32[1,128], index: 2, kind: input, shape index: {}]   ;;  %s1046_s3 = inlined_call_operand.hbm [shape: bf16[128,128], index: 3, kind: input, shape index: {}]   ;;  %s1047_s4 = inlined_call_operand.vmem [shape: f32[1,128], index: 4, kind: input, shape index: {}]   ;;  %s1048_s5 = inlined_call_operand.hbm [shape: bf16[128,128], index: 5, kind: input, shape index: {}]   ;;  %s1049_s6 = inlined_call_operand.vmem [shape: f32[1,128], index: 6, kind: input, shape index: {}]   ;;  %s1050_s7 = inlined_call_operand.hbm [shape: bf16[128,128], index: 7, kind: input, shape index: {}]   ;;  %s1051_s8 = inlined_call_operand.vmem [shape: f32[1,128], index: 8, kind: input, shape index: {}]   ;;  %s1052_s9 = inlined_call_operand.vmem [shape: f32[16,128], index: 9, kind: output, shape index: {}]  }
   0x1   :  { %15 = vsyncpa [#allocation5], 0 }
   0x2   :  { %16 = vsyncpa [#allocation8], 0  ;;  %s850_s30 = smov [#allocation4]   ;;  %s851_s11 = smov [#allocation2]  }
   0x3   :  { %s38_s10 = sshll.u32 %s850_s30, 4  ;;  %s24_s12 = sshll.u32 %s851_s11, 4  ;;  %s39_s10 = int_to_ptr.vmem [resolvable:$true] %s38_s10  ;;  %s908_s12 = int_to_ptr.vmem [resolvable:$true] %s24_s12 }
   0x4   :  { %s756_s15 = scalar_lea.hbm %s1046_s3, 1024 }
   0x5   :  { %p757_p0 = scmp.ne.s32.totalorder %s1046_s3, %s756_s15  ;;  %p760_p1 = scmp.lt.u32.totalorder %s756_s15, %s1046_s3 }
   0x7   :  { %p762_p2 = pnand %p760_p1, %p757_p0 }
   0x9   :  { %765 = shalt.err (!%p762_p2)
}
   0xa   :  { %s766_s20 = scalar_lea.vmem %s39_s10, 1024  ;;  %p771_p4 = scmp.lt.s32.totalorder %s39_s10, %s39_s10 }
   0xb   :  { %p767_p3 = scmp.ne.s32.totalorder %s39_s10, %s766_s20  ;;  %p772_p5 = scmp.lt.s32.totalorder %s766_s20, %s766_s20 }
   0xd   :  { %p773_p6 = por %p772_p5, %p771_p4 }
   0xf   :  { %p774_p7 = pnand %p773_p6, %p767_p3 }
  0x11   :  { %777 = shalt.err (!%p774_p7)
}
  0x12   :  { %s852_s21 = smov 64   ;;  %s853_s22 = smov 4  }
  0x13   :  { %44 = dma.hbm_to_vmem [thread:$0]  %s1046_s3, 1024, %s39_s10, [#allocation5], %s852_s21, %s852_s21, %s853_s22  }
  0x14   :  { %s778_s27 = scalar_lea.hbm %s1044_s1, 1024 }
  0x15   :  { %p779_p8 = scmp.ne.s32.totalorder %s1044_s1, %s778_s27  ;;  %p782_p9 = scmp.lt.u32.totalorder %s778_s27, %s1044_s1 }
  0x17   :  { %p784_p10 = pnand %p782_p9, %p779_p8 }
  0x19   :  { %787 = shalt.err (!%p784_p10)
}
  0x1a   :  { %s788_s13 = scalar_lea.vmem %s908_s12, 1024  ;;  %p793_p12 = scmp.lt.s32.totalorder %s908_s12, %s908_s12 }
  0x1b   :  { %p789_p11 = scmp.ne.s32.totalorder %s908_s12, %s788_s13  ;;  %p794_p13 = scmp.lt.s32.totalorder %s788_s13, %s788_s13 }
  0x1d   :  { %p795_p0 = por %p794_p13, %p793_p12 }
  0x1f   :  { %p796_p1 = pnand %p795_p0, %p789_p11 }
  0x21   :  { %799 = shalt.err (!%p796_p1)
}
  0x22   :  { %30 = dma.hbm_to_vmem [thread:$0]  %s1044_s1, 1024, %s908_s12, [#allocation3], %s852_s21, %s852_s21, %s853_s22  }
  0x23   :  { %s854_s14 = smov [#allocation6]   ;;  %s855_s16 = smov [#allocation7]  }
  0x24   :  { %s52_s15 = sshll.u32 %s854_s14, 4  ;;  %s66_s17 = sshll.u32 %s855_s16, 4  ;;  %s53_s15 = int_to_ptr.vmem [resolvable:$true] %s52_s15  ;;  %s945_s17 = int_to_ptr.vmem [resolvable:$true] %s66_s17 }
  0x25   :  { %s800_s20 = scalar_lea.hbm %s1048_s5, 1024 }
  0x26   :  { %p801_p2 = scmp.ne.s32.totalorder %s1048_s5, %s800_s20  ;;  %p804_p3 = scmp.lt.u32.totalorder %s800_s20, %s1048_s5 }
  0x28   :  { %p806_p4 = pnand %p804_p3, %p801_p2 }
  0x2a   :  { %809 = shalt.err (!%p806_p4)
}
  0x2b   :  { %s810_s1 = scalar_lea.vmem %s53_s15, 1024  ;;  %p815_p6 = scmp.lt.s32.totalorder %s53_s15, %s53_s15 }
  0x2c   :  { %p811_p5 = scmp.ne.s32.totalorder %s53_s15, %s810_s1  ;;  %p816_p7 = scmp.lt.s32.totalorder %s810_s1, %s810_s1 }
  0x2e   :  { %p817_p8 = por %p816_p7, %p815_p6 }
  0x30   :  { %p818_p9 = pnand %p817_p8, %p811_p5 }
  0x32   :  { %821 = shalt.err (!%p818_p9)
}
  0x33   :  { %58 = dma.hbm_to_vmem [thread:$0]  %s1048_s5, 1024, %s53_s15, [#allocation5], %s852_s21, %s852_s21, %s853_s22  }
  0x34   :  { %s822_s30 = scalar_lea.hbm %s1050_s7, 1024 }
  0x35   :  { %p823_p10 = scmp.ne.s32.totalorder %s1050_s7, %s822_s30  ;;  %p826_p11 = scmp.lt.u32.totalorder %s822_s30, %s1050_s7 }
  0x37   :  { %p828_p12 = pnand %p826_p11, %p823_p10 }
  0x39   :  { %831 = shalt.err (!%p828_p12)
}
  0x3a   :  { %s832_s14 = scalar_lea.vmem %s945_s17, 1024  ;;  %p837_p0 = scmp.lt.s32.totalorder %s945_s17, %s945_s17 }
  0x3b   :  { %p833_p13 = scmp.ne.s32.totalorder %s945_s17, %s832_s14  ;;  %p838_p1 = scmp.lt.s32.totalorder %s832_s14, %s832_s14 }
  0x3d   :  { %p839_p2 = por %p838_p1, %p837_p0 }
  0x3f   :  { %p840_p3 = pnand %p839_p2, %p833_p13 }
  0x41   :  { %843 = shalt.err (!%p840_p3)
}
  0x42   :  { %72 = dma.hbm_to_vmem [thread:$0]  %s1050_s7, 1024, %s945_s17, [#allocation8], %s852_s21, %s852_s21, %s853_s22  }
  0x43   :  { %844 = dma.done.wait [#allocation3], 1024  }
  0x44   :  { %845 = vsyncadd [#allocation3], 4294966272 }
  0x45   :  { %846 = dma.done.wait [#allocation5], 2048  }
  0x46   :  { %847 = vsyncadd [#allocation5], 4294965248 }
  0x47   :  { %848 = dma.done.wait [#allocation8], 1024  }
  0x48   :  { %849 = vsyncadd [#allocation8], 4294966272  ;;  %v856_v0 = vmov 0.0   ;;  %vm857_vm0 = vmmov 0   ;;  %v723_v1 = vld [vmem:[#allocation2] sm:$0xff]   ;;  %v724_v2 = vld [vmem:[#allocation2 + $0x8] sm:$0xff]  }
  0x49   :  { %635 = vmatprep.subr.bf16.mxu0 %v856_v0  ;;  %651 = vmatprep.mubr.msk.bf16.mxu0 %vm857_vm0, %v856_v0  ;;  %v725_v3 = vld [vmem:[#allocation2 + $0x10] sm:$0xff]   ;;  %v732_v4 = vld [vmem:[#allocation4] sm:$0xff]   ;;  %v726_v5 = vld [vmem:[#allocation2 + $0x18] sm:$0xff]  }
  0x4a   :  { %655 = vmatprep.subr.bf16.mxu1 %v856_v0  ;;  %671 = vmatprep.mubr.msk.bf16.mxu1 %vm857_vm0, %v856_v0  ;;  %v733_v6 = vld [vmem:[#allocation4 + $0x8] sm:$0xff]   ;;  %v727_v7 = vld [vmem:[#allocation2 + $0x20] sm:$0xff]   ;;  %v734_v8 = vld [vmem:[#allocation4 + $0x10] sm:$0xff]  }
  0x4b   :  { %636 = vmatpush3.bf16.msra.mxu0 %v723_v1  ;;  %656 = vmatpush3.bf16.msra.mxu1 %v732_v4  ;;  %v728_v9 = vld [vmem:[#allocation2 + $0x28] sm:$0xff]   ;;  %v735_v10 = vld [vmem:[#allocation4 + $0x18] sm:$0xff]   ;;  %v729_v11 = vld [vmem:[#allocation2 + $0x30] sm:$0xff]  }
  0x4c   :  { %637 = vmatprep.subr.bf16.mxu0 %v856_v0  ;;  %657 = vmatprep.subr.bf16.mxu1 %v856_v0  ;;  %v736_v12 = vld [vmem:[#allocation4 + $0x20] sm:$0xff]   ;;  %v730_v13 = vld [vmem:[#allocation2 + $0x38] sm:$0xff]   ;;  %v737_v14 = vld [vmem:[#allocation4 + $0x28] sm:$0xff]  }
  0x4d   :  { %v731_v15 = vld [vmem:[%s1043_s0] sm:$0xff]   ;;  %v738_v16 = vld [vmem:[#allocation4 + $0x30] sm:$0xff]   ;;  %v739_v17 = vld [vmem:[#allocation4 + $0x38] sm:$0xff]  }
  0x4e   :  { %v740_v18 = vld [vmem:[#allocation6] sm:$0xff]   ;;  %v741_v19 = vld [vmem:[#allocation6 + $0x8] sm:$0xff]   ;;  %v742_v20 = vld [vmem:[#allocation6 + $0x10] sm:$0xff]  }
  0x4f   :  { %638 = vmatpush3.bf16.msra.mxu0 %v724_v2  ;;  %658 = vmatpush3.bf16.msra.mxu1 %v733_v6  ;;  %v743_v21 = vld [vmem:[#allocation6 + $0x18] sm:$0xff]   ;;  %v744_v22 = vld [vmem:[#allocation6 + $0x20] sm:$0xff]   ;;  %v745_v23 = vld [vmem:[#allocation6 + $0x28] sm:$0xff]  }
  0x50   :  { %639 = vmatprep.subr.bf16.mxu0 %v856_v0  ;;  %659 = vmatprep.subr.bf16.mxu1 %v856_v0  ;;  %v562_v24 = vld [vmem:[%s1045_s2] ss:$0 sm:$0xff]  ;;  %v746_v34 = vld [vmem:[#allocation6 + $0x30] sm:$0xff]   ;;  %v747_v35 = vld [vmem:[#allocation6 + $0x38] sm:$0xff]  }
  0x51   :  { %v748_v36 = vld [vmem:[#allocation7] sm:$0xff]   ;;  %v749_v37 = vld [vmem:[#allocation7 + $0x8] sm:$0xff]   ;;  %v750_v38 = vld [vmem:[#allocation7 + $0x10] sm:$0xff]  }
  0x52   :  { %v751_v39 = vld [vmem:[#allocation7 + $0x18] sm:$0xff]   ;;  %v752_v40 = vld [vmem:[#allocation7 + $0x20] sm:$0xff]   ;;  %v753_v41 = vld [vmem:[#allocation7 + $0x28] sm:$0xff]  }
  0x53   :  { %640 = vmatpush3.bf16.msra.mxu0 %v725_v3  ;;  %660 = vmatpush3.bf16.msra.mxu1 %v734_v8  ;;  %v572_v42 = vld [vmem:[%s1047_s4] ss:$0 sm:$0xff]  ;;  %v754_v52 = vld [vmem:[#allocation7 + $0x30] sm:$0xff]   ;;  %v755_v53 = vld [vmem:[#allocation7 + $0x38] sm:$0xff]  }
  0x54   :  { %641 = vmatprep.subr.bf16.mxu0 %v856_v0  ;;  %661 = vmatprep.subr.bf16.mxu1 %v856_v0  ;;  %v581_v54 = vld [vmem:[%s1049_s6] ss:$0 sm:$0xff] }
  0x57   :  { %642 = vmatpush3.bf16.msra.mxu0 %v726_v5  ;;  %662 = vmatpush3.bf16.msra.mxu1 %v735_v10 }
  0x58   :  { %643 = vmatprep.subr.bf16.mxu0 %v856_v0  ;;  %663 = vmatprep.subr.bf16.mxu1 %v856_v0 }
  0x5b   :  { %644 = vmatpush3.bf16.msra.mxu0 %v727_v7  ;;  %664 = vmatpush3.bf16.msra.mxu1 %v736_v12 }
  0x5c   :  { %645 = vmatprep.subr.bf16.mxu0 %v856_v0  ;;  %665 = vmatprep.subr.bf16.mxu1 %v856_v0 }
  0x5f   :  { %646 = vmatpush3.bf16.msra.mxu0 %v728_v9  ;;  %666 = vmatpush3.bf16.msra.mxu1 %v737_v14 }
  0x60   :  { %647 = vmatprep.subr.bf16.mxu0 %v856_v0  ;;  %667 = vmatprep.subr.bf16.mxu1 %v856_v0 }
  0x63   :  { %648 = vmatpush3.bf16.msra.mxu0 %v729_v11  ;;  %668 = vmatpush3.bf16.msra.mxu1 %v738_v16 }
  0x64   :  { %649 = vmatprep.subr.bf16.mxu0 %v856_v0  ;;  %669 = vmatprep.subr.bf16.mxu1 %v856_v0 }
  0x67   :  { %650 = vmatpush3.bf16.msra.mxu0 %v730_v13  ;;  %670 = vmatpush3.bf16.msra.mxu1 %v739_v17 }
  0x68   :  { %675 = vmatprep.subr.bf16.mxu0 %v856_v0  ;;  %695 = vmatprep.subr.bf16.mxu1 %v856_v0 }
  0x6a   :  { %652 = vmatmul.mubr.bf16.vlgmr.msra.gmra.mrb[0].mxu0 %v731_v15 }
  0x6b   :  { %691 = vmatprep.mubr.msk.bf16.mxu0 %vm857_vm0, %v856_v0  ;;  %676 = vmatpush3.bf16.msra.mxu0 %v740_v18 }
  0x6c   :  { %677 = vmatprep.subr.bf16.mxu0 %v856_v0 }
  0x6f   :  { %678 = vmatpush3.bf16.msra.mxu0 %v741_v19 }
  0x70   :  { %679 = vmatprep.subr.bf16.mxu0 %v856_v0 }
  0x73   :  { %680 = vmatpush3.bf16.msra.mxu0 %v742_v20 }
  0x74   :  { %681 = vmatprep.subr.bf16.mxu0 %v856_v0 }
  0x77   :  { %682 = vmatpush3.bf16.msra.mxu0 %v743_v21 }
  0x78   :  { %683 = vmatprep.subr.bf16.mxu0 %v856_v0 }
  0x7b   :  { %684 = vmatpush3.bf16.msra.mxu0 %v744_v22 }
  0x7c   :  { %685 = vmatprep.subr.bf16.mxu0 %v856_v0 }
  0x7f   :  { %686 = vmatpush3.bf16.msra.mxu0 %v745_v23 }
  0x80   :  { %687 = vmatprep.subr.bf16.mxu0 %v856_v0 }
  0x83   :  { %688 = vmatpush3.bf16.msra.mxu0 %v746_v34 }
  0x84   :  { %689 = vmatprep.subr.bf16.mxu0 %v856_v0 }
  0x87   :  { %690 = vmatpush3.bf16.msra.mxu0 %v747_v35 }
 0x13d   :  { %v201_v25 = vpop.f32.mrb[0].mxu0 }
 0x13e   :  { %v202_v26 = vadd.f32 %v562_v24, %v201_v25  ;;  %v653_v27 = vpop.f32.mrb[1].mxu0 }
 0x13f   :  { %v204_v28 = vpop.f32.mrb[2].mxu0 }
 0x140   :  { %v205_v29 = vadd.f32 %v562_v24, %v204_v28  ;;  %v654_v30 = vpop.f32.mrb[3].mxu0  ;;  %v208_v31 = vmax.f32 %v202_v26, 0.0 }
 0x142   :  { %v209_v32 = vmax.f32 %v205_v29, 0.0 }
 0x144   :  { %v210_v33 = vpack.c.bf16 %v209_v32, %v208_v31 }
 0x146   :  { %672 = vmatmul.mubr.bf16.vlgmr.msra.gmra.mrb[0].mxu1 %v210_v33 }
 0x147   :  { %711 = vmatprep.mubr.msk.bf16.mxu1 %vm857_vm0, %v856_v0  ;;  %696 = vmatpush3.bf16.msra.mxu1 %v748_v36 }
 0x148   :  { %697 = vmatprep.subr.bf16.mxu1 %v856_v0 }
 0x14b   :  { %698 = vmatpush3.bf16.msra.mxu1 %v749_v37 }
 0x14c   :  { %699 = vmatprep.subr.bf16.mxu1 %v856_v0 }
 0x14f   :  { %700 = vmatpush3.bf16.msra.mxu1 %v750_v38 }
 0x150   :  { %701 = vmatprep.subr.bf16.mxu1 %v856_v0 }
 0x153   :  { %702 = vmatpush3.bf16.msra.mxu1 %v751_v39 }
 0x154   :  { %703 = vmatprep.subr.bf16.mxu1 %v856_v0 }
 0x157   :  { %704 = vmatpush3.bf16.msra.mxu1 %v752_v40 }
 0x158   :  { %705 = vmatprep.subr.bf16.mxu1 %v856_v0 }
 0x15b   :  { %706 = vmatpush3.bf16.msra.mxu1 %v753_v41 }
 0x15c   :  { %707 = vmatprep.subr.bf16.mxu1 %v856_v0 }
 0x15f   :  { %708 = vmatpush3.bf16.msra.mxu1 %v754_v52 }
 0x160   :  { %709 = vmatprep.subr.bf16.mxu1 %v856_v0  ;;  %v590_v0 = vld [vmem:[%s1051_s8] ss:$0 sm:$0xff] }
 0x163   :  { %710 = vmatpush3.bf16.msra.mxu1 %v755_v53 }
 0x219   :  { %v316_v43 = vpop.f32.mrb[0].mxu1 }
 0x21a   :  { %v317_v44 = vadd.f32 %v572_v42, %v316_v43  ;;  %v673_v45 = vpop.f32.mrb[1].mxu1 }
 0x21b   :  { %v319_v46 = vpop.f32.mrb[2].mxu1 }
 0x21c   :  { %v320_v47 = vadd.f32 %v572_v42, %v319_v46  ;;  %v674_v48 = vpop.f32.mrb[3].mxu1  ;;  %v323_v49 = vmax.f32 %v317_v44, 0.0 }
 0x21e   :  { %v324_v50 = vmax.f32 %v320_v47, 0.0 }
 0x220   :  { %v325_v51 = vpack.c.bf16 %v324_v50, %v323_v49 }
 0x222   :  { %692 = vmatmul.mubr.bf16.vlgmr.msra.gmra.mrb[4].mxu0 %v325_v51 }
 0x2f5   :  { %v431_v55 = vpop.f32.mrb[4].mxu0 }
 0x2f6   :  { %v432_v56 = vadd.f32 %v581_v54, %v431_v55  ;;  %v693_v57 = vpop.f32.mrb[5].mxu0 }
 0x2f7   :  { %v434_v58 = vpop.f32.mrb[6].mxu0 }
 0x2f8   :  { %v435_v59 = vadd.f32 %v581_v54, %v434_v58  ;;  %v694_v60 = vpop.f32.mrb[7].mxu0  ;;  %v438_v61 = vmax.f32 %v432_v56, 0.0 }
 0x2fa   :  { %v439_v62 = vmax.f32 %v435_v59, 0.0 }
 0x2fc   :  { %v440_v63 = vpack.c.bf16 %v439_v62, %v438_v61 }
 0x2fe   :  { %712 = vmatmul.mubr.bf16.vlgmr.msra.gmra.mrb[4].mxu1 %v440_v63 }
 0x3d1   :  { %v546_v1 = vpop.f32.mrb[4].mxu1 }
 0x3d2   :  { %v547_v2 = vadd.f32 %v590_v0, %v546_v1  ;;  %v713_v3 = vpop.f32.mrb[5].mxu1 }
 0x3d3   :  { %v549_v4 = vpop.f32.mrb[6].mxu1 }
 0x3d4   :  { %553 = vst [vmem:[%s1052_s9] sm:$0xff] %v547_v2  ;;  %v550_v5 = vadd.f32 %v590_v0, %v549_v4  ;;  %v714_v6 = vpop.f32.mrb[7].mxu1 }
 0x3d6   :  { %554 = vst [vmem:[%s1052_s9 + $0x8] sm:$0xff] %v550_v5 }
 0x3d7   :  { %559 = vsyncpa [#allocation3], 1 }
 0x3d8   :  { %560 = vsyncpa [#allocation5], 1 }
 0x3d9   :  { %561 = vsyncpa [#allocation8], 1 }

</bundles_post_ra>
